<compile_context>
chip_gen: v6e
topology: v6e:2x2x1
jax: 0.10.0
libtpu: 0.0.40
codegen_flags: <defaults>
</compile_context>

<pallas_src>
import math
import jax
import jax.numpy as jnp
from jax.scipy.linalg import block_diag
from jax.experimental import pallas as pl
from jax.experimental.pallas import tpu as pltpu  # noqa: F401  (not needed for this grid-less kernel)


# ----------------------------------------------------------------------------
# Model config
# ----------------------------------------------------------------------------
B, C, H, W = 2, 4, 16, 16    # input images, NCHW
P = 8                        # patch size
NH, NW = H // P, W // P
N_PATCH = NH * NW            # N = 4
D = 32                       # token dim
PATCH_DIM = C * P * P        # 256
ENCODER_DIM = N_PATCH * D    # 128  (H/P * W/P * D)
LATENT_DIM = 32
T_STEPS = 5                  # timesteps t1..t5
ROWS = T_STEPS * B           # 10 rows: all timesteps folded into the row axis
X_WIDTH = N_PATCH * PATCH_DIM + LATENT_DIM   # 1056 = [patches | eps]

# Row offsets inside the 128-lane-wide weight slab (all multiples of 8).
EMB_W_ROW = 0                                   # block-diag patch embed (1024 rows)
EMB_B_ROW = N_PATCH * PATCH_DIM                 # 1024
MUVAR_W_ROW = 1032                              # [mu_w | var_w | 0] (128 rows)
MUVAR_B_ROW = MUVAR_W_ROW + ENCODER_DIM         # 1160
FCDEC_W_ROW = 1168                              # fc_decoder weight (32 rows)
FCDEC_B_ROW = FCDEC_W_ROW + LATENT_DIM          # 1200
SLAB128_ROWS = FCDEC_B_ROW + 1                  # 1201

# Row offsets inside the 1024-lane-wide weight slab.
DEC_W_ROW = 0                                   # block-diag (dec∘up) fold (128 rows)
DEC_B_ROW = ENCODER_DIM                         # 128
SLAB1024_ROWS = DEC_B_ROW + 1                   # 129


# ----------------------------------------------------------------------------
# Fused Pallas kernel: encoder embed -> fc_mu|fc_var -> reparameterize
#                      -> fc_decoder -> (decoder ∘ upsample) fold
# ----------------------------------------------------------------------------
def _vae_fused_kernel(x_ref, w128_ref, w1024_ref, pix_ref, mlz_ref):
    f32 = jnp.float32
    L = LATENT_DIM

    patches = x_ref[:, 0:N_PATCH * PATCH_DIM]            # (ROWS, 1024)
    eps = x_ref[:, N_PATCH * PATCH_DIM:]                 # (ROWS, 32)

    # -- encoder stand-in: per-patch embedding as ONE block-diagonal matmul
    #    whose output lane layout already IS flatten(start_dim=1) -------------
    w_emb = w128_ref[EMB_W_ROW:EMB_W_ROW + N_PATCH * PATCH_DIM, :]   # (1024, 128)
    b_emb = w128_ref[EMB_B_ROW:EMB_B_ROW + 1, :]                     # (1, 128)
    emb_flat = jnp.dot(patches, w_emb, preferred_element_type=f32) + b_emb  # (ROWS, 128)

    # -- fc_mu | fc_var fused: lanes [mu | log_var | 0 | 0] -------------------
    w_muvar = w128_ref[MUVAR_W_ROW:MUVAR_W_ROW + ENCODER_DIM, :]     # (128, 128)
    b_muvar = w128_ref[MUVAR_B_ROW:MUVAR_B_ROW + 1, :]               # (1, 128)
    mu_lv = jnp.dot(emb_flat, w_muvar, preferred_element_type=f32) + b_muvar

    # single dense 128-lane store of the packed latent slab (z/std lanes are
    # zero here and overwritten below)
    mlz_ref[...] = mu_lv.astype(mlz_ref.dtype)

    # -- reparameterize -------------------------------------------------------
    mu = mu_lv[:, 0:L]
    log_var = mu_lv[:, L:2 * L]
    std = jnp.exp(0.5 * log_var)
    z = eps * std + mu
    mlz_ref[:, 2 * L:3 * L] = z
    mlz_ref[:, 3 * L:4 * L] = std

    # -- fc_decoder (VanillaVAE parameter, kept explicit) ---------------------
    w_fcd = w128_ref[FCDEC_W_ROW:FCDEC_W_ROW + L, :]                 # (32, 128)
    b_fcd = w128_ref[FCDEC_B_ROW:FCDEC_B_ROW + 1, :]                 # (1, 128)
    dec_emb = jnp.dot(z, w_fcd, preferred_element_type=f32) + b_fcd  # (ROWS, 128)

    # -- decoder + upsample stand-ins, folded (W_du = dec_w@up_w) and
    #    distributed block-diagonally over the N patch tokens: the .view(B,N,D)
    #    repack is absorbed into the weight; query_pos folded into the bias ---
    w_dec = w1024_ref[DEC_W_ROW:DEC_W_ROW + ENCODER_DIM, :]          # (128, 1024)
    b_dec = w1024_ref[DEC_B_ROW:DEC_B_ROW + 1, :]                    # (1, 1024)
    pix = jnp.dot(dec_emb, w_dec, preferred_element_type=f32) + b_dec
    pix_ref[...] = pix.astype(pix_ref.dtype)                         # (ROWS, 1024)


def vae_fused(x_in, slab128, slab1024):
    rows = x_in.shape[0]
    return pl.pallas_call(
        _vae_fused_kernel,
        out_shape=(
            jax.ShapeDtypeStruct((rows, N_PATCH * PATCH_DIM), jnp.float32),
            jax.ShapeDtypeStruct((rows, 4 * LATENT_DIM), jnp.float32),
        ),
    )(x_in, slab128, slab1024)


# ----------------------------------------------------------------------------
# Plain-JAX glue: patchify / unpatchify / params / pos-enc / slab packing
# ----------------------------------------------------------------------------
def patchify(x):
    # [M, C, H, W] -> [M, N, C*P*P]
    m = x.shape[0]
    x = x.reshape(m, C, NH, P, NW, P)
    x = jnp.transpose(x, (0, 2, 4, 1, 3, 5))
    return x.reshape(m, N_PATCH, PATCH_DIM)


def unpatchify(p):
    # [M, N, C*P*P] -> [M, C, H, W]
    m = p.shape[0]
    x = p.reshape(m, NH, NW, C, P, P)
    x = jnp.transpose(x, (0, 3, 1, 4, 2, 5))
    return x.reshape(m, C, H, W)


def sinusoidal_pos_enc(n, d):
    pos = jnp.arange(n, dtype=jnp.float32)[:, None]
    i = jnp.arange(d, dtype=jnp.float32)[None, :]
    angle = pos / jnp.power(10000.0, (2.0 * jnp.floor(i / 2.0)) / d)
    pe = jnp.where((jnp.arange(d) % 2) == 0, jnp.sin(angle), jnp.cos(angle))
    return pe.astype(jnp.float32)  # [n, d]


def init_params(key):
    ks = jax.random.split(key, 10)

    def lin(kw, fan_in, fan_out):
        scale = 1.0 / math.sqrt(fan_in)
        w = jax.random.normal(kw, (fan_in, fan_out), jnp.float32) * scale
        b = jnp.zeros((1, fan_out), jnp.float32)
        return w, b

    params = {}
    # encoder stand-in: patch-embedding linear
    params["enc_w"], params["enc_b"] = lin(ks[0], PATCH_DIM, D)
    # VanillaVAE parameters
    params["mu_w"], params["mu_b"] = lin(ks[1], ENCODER_DIM, LATENT_DIM)
    params["var_w"], params["var_b"] = lin(ks[2], ENCODER_DIM, LATENT_DIM)
    params["fcdec_w"], params["fcdec_b"] = lin(ks[3], LATENT_DIM, ENCODER_DIM)
    # decoder stand-in: linear over (tgt + query_pos)
    params["dec_w"], params["dec_b"] = lin(ks[4], D, D)
    # upsampling stand-in: linear token -> patch pixels
    params["up_w"], params["up_b"] = lin(ks[5], D, PATCH_DIM)
    return params


def pack_operands(params):
    """Fold / pack all 12 weight & bias tensors into two lane-dense f32 slabs
    (init-time, outside the kernel).  Pure layout plumbing + exact linear
    algebra; no approximation."""
    f32 = jnp.float32
    pos = sinusoidal_pos_enc(N_PATCH, D)                       # (N, D)

    enc_w, enc_b = params["enc_w"], params["enc_b"]
    mu_w, mu_b = params["mu_w"], params["mu_b"]
    var_w, var_b = params["var_w"], params["var_b"]
    fcdec_w, fcdec_b = params["fcdec_w"], params["fcdec_b"]
    dec_w, dec_b = params["dec_w"], params["dec_b"]
    up_w, up_b = params["up_w"], params["up_b"]

    # (a) block-diag patch embedding: (patches_wide) @ W -> flatten(start_dim=1)
    w_emb = block_diag(*([enc_w] * N_PATCH)).astype(f32)       # (1024, 128)
    b_emb = jnp.tile(enc_b, (1, N_PATCH)).astype(f32)          # (1, 128)

    # (b) fused fc_mu | fc_var, lane-padded to 128
    muvar_w = jnp.concatenate([mu_w, var_w], axis=1)           # (128, 64)
    muvar_b = jnp.concatenate([mu_b, var_b], axis=1)           # (1, 64)
    muvar_w_p = jnp.pad(muvar_w, ((0, 0), (0, 2 * LATENT_DIM)))
    muvar_b_p = jnp.pad(muvar_b, ((0, 0), (0, 2 * LATENT_DIM)))

    # (c) decoder ∘ upsample fold + query_pos fold, block-diag over patches
    w_du = dec_w @ up_w                                        # (32, 256)
    b_du = dec_b @ up_w + up_b                                 # (1, 256)
    pos_proj = pos @ w_du                                      # (N, 256)
    w_dec_bd = block_diag(*([w_du] * N_PATCH)).astype(f32)     # (128, 1024)
    b_dec_bd = (pos_proj + b_du).reshape(1, N_PATCH * PATCH_DIM)

    pad7 = jnp.zeros((7, ENCODER_DIM), f32)
    slab128 = jnp.concatenate(
        [w_emb, b_emb, pad7, muvar_w_p, muvar_b_p, pad7, fcdec_w, fcdec_b],
        axis=0)
    slab1024 = jnp.concatenate([w_dec_bd, b_dec_bd], axis=0)

    assert slab128.shape == (SLAB128_ROWS, ENCODER_DIM)
    assert slab1024.shape == (SLAB1024_ROWS, N_PATCH * PATCH_DIM)
    return slab128, slab1024


@jax.jit
def vanilla_vae_stacked(x_stack, eps_stack, slab128, slab1024):
    """All 5 timesteps in one fused kernel launch.
    x_stack: [T,B,C,H,W], eps_stack: [T,B,L]."""
    t = x_stack.shape[0]
    p = patchify(x_stack.reshape(t * B, C, H, W))              # (T*B, N, PD)
    patches_wide = p.reshape(t * B, N_PATCH * PATCH_DIM)       # (T*B, 1024)
    eps2 = eps_stack.reshape(t * B, LATENT_DIM)                # (T*B, 32)
    x_in = jnp.concatenate([patches_wide, eps2], axis=1)       # (T*B, 1056)

    pix, mlz = vae_fused(x_in, slab128, slab1024)

    recon = unpatchify(pix.reshape(t * B, N_PATCH, PATCH_DIM)).reshape(t, B, C, H, W)
    mlz = mlz.reshape(t, B, 4 * LATENT_DIM)
    mu = mlz[..., 0:LATENT_DIM]
    log_var = mlz[..., LATENT_DIM:2 * LATENT_DIM]
    z = mlz[..., 2 * LATENT_DIM:3 * LATENT_DIM]
    return recon, z, mu, log_var


def vanilla_vae_forward(sample, params, eps_key):
    keys = ["t1", "t2", "t3", "t4", "t5"]
    x_stack = jnp.stack([sample[k] for k in keys], axis=0)               # [T,B,C,H,W]
    eps_stack = jax.random.normal(eps_key, (len(keys), B, LATENT_DIM), jnp.float32)
    slab128, slab1024 = pack_operands(params)
    recon, z, mu, log_var = vanilla_vae_stacked(x_stack, eps_stack, slab128, slab1024)
    recon_output = {k: recon[i] for i, k in enumerate(keys)}
    z_dict = {k: z[i] for i, k in enumerate(keys)}
    mu_dict = {k: mu[i] for i, k in enumerate(keys)}
    log_var_dict = {k: log_var[i] for i, k in enumerate(keys)}
    return recon_output, z_dict, mu_dict, log_var_dict


def reference_forward(x_stack, eps_stack, pos, params):
    """Pure-JAX reference of the same forward, using the ORIGINAL (unfused,
    unfolded) parameters -- validates every fold/pack done for the kernel."""
    t = x_stack.shape[0]
    tokens = patchify(x_stack.reshape(t * B, C, H, W))                   # [t*B,N,PD]
    emb = tokens @ params["enc_w"] + params["enc_b"]                     # [t*B,N,D]
    emb_flat = emb.reshape(t, B, ENCODER_DIM)                            # flatten(1)
    mu = emb_flat @ params["mu_w"] + params["mu_b"]
    log_var = emb_flat @ params["var_w"] + params["var_b"]
    std = jnp.exp(0.5 * log_var)
    z = eps_stack * std + mu
    dec = (z @ params["fcdec_w"] + params["fcdec_b"]).reshape(t, B, N_PATCH, D)
    out = (dec + pos[None, None]) @ params["dec_w"] + params["dec_b"]
    pix = out @ params["up_w"] + params["up_b"]
    recon = unpatchify(pix.reshape(t * B, N_PATCH, PATCH_DIM)).reshape(t, B, C, H, W)
    return recon, z, mu, log_var


# ----------------------------------------------------------------------------
# Main
# ----------------------------------------------------------------------------
if __name__ == "__main__":
    root = jax.random.PRNGKey(0)
    k_params, k_data, k_eps = jax.random.split(root, 3)

    params = init_params(k_params)

    data_keys = jax.random.split(k_data, 7)
    sample = {
        "base": jax.random.normal(data_keys[0], (B, C, H, W), jnp.float32),
        "t1": jax.random.normal(data_keys[1], (B, C, H, W), jnp.float32),
        "t2": jax.random.normal(data_keys[2], (B, C, H, W), jnp.float32),
        "t3": jax.random.normal(data_keys[3], (B, C, H, W), jnp.float32),
        "t4": jax.random.normal(data_keys[4], (B, C, H, W), jnp.float32),
        "t5": jax.random.normal(data_keys[5], (B, C, H, W), jnp.float32),
        "change": jax.random.normal(data_keys[6], (B, C, H, W), jnp.float32),
        "mask": jnp.ones((B, 1, H, W), jnp.float32),
    }

    recon, z_d, mu_d, lv_d = vanilla_vae_forward(sample, params, k_eps)

    keys = ["t1", "t2", "t3", "t4", "t5"]
    for k in keys:
        jax.block_until_ready(recon[k])
        jax.block_until_ready(z_d[k])
        jax.block_until_ready(mu_d[k])
        jax.block_until_ready(lv_d[k])
        assert recon[k].shape == (B, C, H, W)
        assert z_d[k].shape == (B, LATENT_DIM)
        assert mu_d[k].shape == (B, LATENT_DIM)
        assert lv_d[k].shape == (B, LATENT_DIM)

    # correctness check vs pure-JAX reference (original, unfolded params)
    x_stack = jnp.stack([sample[k] for k in keys], axis=0)
    eps_stack = jax.random.normal(k_eps, (len(keys), B, LATENT_DIM), jnp.float32)
    pos = sinusoidal_pos_enc(N_PATCH, D)
    ref_recon, ref_z, ref_mu, ref_lv = reference_forward(x_stack, eps_stack, pos, params)
    got_recon = jnp.stack([recon[k] for k in keys], axis=0)
    got_z = jnp.stack([z_d[k] for k in keys], axis=0)
    got_mu = jnp.stack([mu_d[k] for k in keys], axis=0)
    got_lv = jnp.stack([lv_d[k] for k in keys], axis=0)
    assert jnp.allclose(got_mu, ref_mu, rtol=1e-2, atol=1e-2)
    assert jnp.allclose(got_lv, ref_lv, rtol=1e-2, atol=1e-2)
    assert jnp.allclose(got_z, ref_z, rtol=1e-2, atol=1e-2)
    assert jnp.allclose(got_recon, ref_recon, rtol=1e-2, atol=1e-2)

    print("KERNEL_OK")
</pallas_src>

<mosaic_0001>
module attributes {stable_mosaic.version = 11 : i64} {
  func.func @_vae_fused_kernel(%arg0: memref<10x1056xf32, #tpu.memory_space<vmem>>, %arg1: memref<1201x128xf32, #tpu.memory_space<vmem>>, %arg2: memref<129x1024xf32, #tpu.memory_space<vmem>>, %arg3: memref<10x1024xf32, #tpu.memory_space<vmem>>, %arg4: memref<10x128xf32, #tpu.memory_space<vmem>>) attributes {dimension_semantics = [], scalar_prefetch = 0 : i64, scratch_operands = 0 : i64, tpu.core_type = #tpu.core_type<tc>} {
    %c0 = arith.constant 0 : index
    %c0_0 = arith.constant 0 : index
    %0 = vector.load %arg0[%c0, %c0_0] : memref<10x1056xf32, #tpu.memory_space<vmem>>, vector<10x1024xf32>
    %c0_1 = arith.constant 0 : index
    %c1024 = arith.constant 1024 : index
    %1 = vector.load %arg0[%c0_1, %c1024] : memref<10x1056xf32, #tpu.memory_space<vmem>>, vector<10x32xf32>
    %c0_2 = arith.constant 0 : index
    %c0_3 = arith.constant 0 : index
    %2 = vector.load %arg1[%c0_2, %c0_3] : memref<1201x128xf32, #tpu.memory_space<vmem>>, vector<1024x128xf32>
    %c1024_4 = arith.constant 1024 : index
    %c0_5 = arith.constant 0 : index
    %3 = vector.load %arg1[%c1024_4, %c0_5] : memref<1201x128xf32, #tpu.memory_space<vmem>>, vector<1x128xf32>
    %cst = arith.constant dense<0.000000e+00> : vector<10x128xf32>
    %4 = tpu.matmul %0, %2, %cst {dimension_numbers = #tpu.dot_dimension_numbers<[1], [0], [0], [1], [0, 0, 1, 1], [], []>} : vector<10x1024xf32>, vector<1024x128xf32>, vector<10x128xf32> -> vector<10x128xf32>
    %5 = vector.broadcast %3 : vector<1x128xf32> to vector<10x128xf32>
    %6 = arith.addf %4, %5 : vector<10x128xf32>
    %c1032 = arith.constant 1032 : index
    %c0_6 = arith.constant 0 : index
    %7 = vector.load %arg1[%c1032, %c0_6] : memref<1201x128xf32, #tpu.memory_space<vmem>>, vector<128x128xf32>
    %c1160 = arith.constant 1160 : index
    %c0_7 = arith.constant 0 : index
    %8 = vector.load %arg1[%c1160, %c0_7] : memref<1201x128xf32, #tpu.memory_space<vmem>>, vector<1x128xf32>
    %cst_8 = arith.constant dense<0.000000e+00> : vector<10x128xf32>
    %9 = tpu.matmul %6, %7, %cst_8 {dimension_numbers = #tpu.dot_dimension_numbers<[1], [0], [0], [1], [0, 0, 1, 1], [], []>} : vector<10x128xf32>, vector<128x128xf32>, vector<10x128xf32> -> vector<10x128xf32>
    %10 = vector.broadcast %8 : vector<1x128xf32> to vector<10x128xf32>
    %11 = arith.addf %9, %10 : vector<10x128xf32>
    %c0_9 = arith.constant 0 : index
    %c0_10 = arith.constant 0 : index
    %12 = vector.load %arg4[%c0_9, %c0_10] : memref<10x128xf32, #tpu.memory_space<vmem>>, vector<10x128xf32>
    tpu.vector_store %arg4[%c0_9, %c0_10], %11 {strides = array<i32>} : memref<10x128xf32, #tpu.memory_space<vmem>>, vector<10x128xf32>,
    %13 = vector.extract_strided_slice %11 {offsets = [0, 0], sizes = [10, 32], strides = [1, 1]} : vector<10x128xf32> to vector<10x32xf32>
    %14 = vector.extract_strided_slice %11 {offsets = [0, 32], sizes = [10, 32], strides = [1, 1]} : vector<10x128xf32> to vector<10x32xf32>
    %cst_11 = arith.constant 5.000000e-01 : f32
    %15 = vector.broadcast %cst_11 : f32 to vector<10x32xf32>
    %16 = arith.mulf %15, %14 : vector<10x32xf32>
    %17 = math.exp %16 : vector<10x32xf32>
    %18 = arith.mulf %1, %17 : vector<10x32xf32>
    %19 = arith.addf %18, %13 : vector<10x32xf32>
    %c0_12 = arith.constant 0 : index
    %c64 = arith.constant 64 : index
    %20 = vector.load %arg4[%c0_12, %c64] : memref<10x128xf32, #tpu.memory_space<vmem>>, vector<10x32xf32>
    tpu.vector_store %arg4[%c0_12, %c64], %19 {strides = array<i32>} : memref<10x128xf32, #tpu.memory_space<vmem>>, vector<10x32xf32>,
    %c0_13 = arith.constant 0 : index
    %c96 = arith.constant 96 : index
    %21 = vector.load %arg4[%c0_13, %c96] : memref<10x128xf32, #tpu.memory_space<vmem>>, vector<10x32xf32>
    tpu.vector_store %arg4[%c0_13, %c96], %17 {strides = array<i32>} : memref<10x128xf32, #tpu.memory_space<vmem>>, vector<10x32xf32>,
    %c1168 = arith.constant 1168 : index
    %c0_14 = arith.constant 0 : index
    %22 = vector.load %arg1[%c1168, %c0_14] : memref<1201x128xf32, #tpu.memory_space<vmem>>, vector<32x128xf32>
    %c1200 = arith.constant 1200 : index
    %c0_15 = arith.constant 0 : index
    %23 = vector.load %arg1[%c1200, %c0_15] : memref<1201x128xf32, #tpu.memory_space<vmem>>, vector<1x128xf32>
    %cst_16 = arith.constant dense<0.000000e+00> : vector<10x128xf32>
    %24 = tpu.matmul %19, %22, %cst_16 {dimension_numbers = #tpu.dot_dimension_numbers<[1], [0], [0], [1], [0, 0, 1, 1], [], []>} : vector<10x32xf32>, vector<32x128xf32>, vector<10x128xf32> -> vector<10x128xf32>
    %25 = vector.broadcast %23 : vector<1x128xf32> to vector<10x128xf32>
    %26 = arith.addf %24, %25 : vector<10x128xf32>
    %c0_17 = arith.constant 0 : index
    %c0_18 = arith.constant 0 : index
    %27 = vector.load %arg2[%c0_17, %c0_18] : memref<129x1024xf32, #tpu.memory_space<vmem>>, vector<128x1024xf32>
    %c128 = arith.constant 128 : index
    %c0_19 = arith.constant 0 : index
    %28 = vector.load %arg2[%c128, %c0_19] : memref<129x1024xf32, #tpu.memory_space<vmem>>, vector<1x1024xf32>
    %cst_20 = arith.constant dense<0.000000e+00> : vector<10x1024xf32>
    %29 = tpu.matmul %26, %27, %cst_20 {dimension_numbers = #tpu.dot_dimension_numbers<[1], [0], [0], [1], [0, 0, 1, 1], [], []>} : vector<10x128xf32>, vector<128x1024xf32>, vector<10x1024xf32> -> vector<10x1024xf32>
    %30 = vector.broadcast %28 : vector<1x1024xf32> to vector<10x1024xf32>
    %31 = arith.addf %29, %30 : vector<10x1024xf32>
    %c0_21 = arith.constant 0 : index
    %c0_22 = arith.constant 0 : index
    %32 = vector.load %arg3[%c0_21, %c0_22] : memref<10x1024xf32, #tpu.memory_space<vmem>>, vector<10x1024xf32>
    tpu.vector_store %arg3[%c0_21, %c0_22], %31 {strides = array<i32>} : memref<10x1024xf32, #tpu.memory_space<vmem>>, vector<10x1024xf32>,
    return
  }
}

</mosaic_0001>

<bundles_post_ra>
// kernel: vanilla_vae_stacked.1
= control target key start
LH: loop header
LB: loop body
LE: loop exit
PB: predicated region body
PF: predicated region fallthrough
CT: control target
= control target key end

     0   :  { %s1435_s13 = smov 96   ;;  %s1436_s14 = smov 64   ;;  %vm614_vm0 = vcmask 261120   ;;  %vm593_vm1 = vcmask 779776   ;;  %vm591_vm2 = vcmask 785920   ;;  %vm601_vm3 = vcmask 1048320   ;;  %s2452_s1 = inlined_call_operand.vmem [shape: f32[1201,128], index: 1, kind: input, shape index: {}]   ;;  %s2453_s0 = inlined_call_operand.vmem [shape: f32[10,1056], index: 0, kind: input, shape index: {}]   ;;  %s2454_s4 = inlined_call_operand.vmem [shape: f32[10,128], index: 4, kind: output, shape index: {1}]   ;;  %s2455_s2 = inlined_call_operand.vmem [shape: f32[129,1024], index: 2, kind: input, shape index: {}]   ;;  %s2456_s3 = inlined_call_operand.vmem [shape: f32[10,1024], index: 3, kind: output, shape index: {0}]  }
   0x1   :  { %v65_v0 = vld [vmem:[%s2452_s1 + $0xf8] sm:$0xff]  ;;  %v64_v4 = vld [vmem:[%s2452_s1 + $0xf0] sm:$0xff]  ;;  %v63_v8 = vld [vmem:[%s2452_s1 + $0xe8] sm:$0xff]  ;;  %vm603_vm4 = vcmask 1042176  }
   0x2   :  { %v97_v1 = vld [vmem:[%s2452_s1 + $0x1f8] sm:$0xff]  ;;  %1206 = vmatprep.subr.mxu0 %v65_v0  ;;  %v96_v5 = vld [vmem:[%s2452_s1 + $0x1f0] sm:$0xff]  ;;  %v95_v9 = vld [vmem:[%s2452_s1 + $0x1e8] sm:$0xff] }
   0x3   :  { %v49_v2 = vld [vmem:[%s2452_s1 + $0x78] sm:$0xff]  ;;  %1244 = vmatprep.subr.mxu1 %v97_v1  ;;  %v48_v6 = vld [vmem:[%s2452_s1 + $0x70] sm:$0xff]  ;;  %v47_v10 = vld [vmem:[%s2452_s1 + $0x68] sm:$0xff] }
   0x4   :  { %v81_v3 = vld [vmem:[%s2452_s1 + $0x178] sm:$0xff]  ;;  %1207 = vmatpush3.msra.mxu0 %v49_v2  ;;  %v80_v7 = vld [vmem:[%s2452_s1 + $0x170] sm:$0xff]  ;;  %v79_v11 = vld [vmem:[%s2452_s1 + $0x168] sm:$0xff] }
   0x5   :  { %1245 = vmatpush3.msra.mxu1 %v81_v3  ;;  %1208 = vmatprep.subr.mxu0 %v64_v4  ;;  %v62_v12 = vld [vmem:[%s2452_s1 + $0xe0] sm:$0xff]  ;;  %v61_v16 = vld [vmem:[%s2452_s1 + $0xd8] sm:$0xff]  ;;  %v60_v20 = vld [vmem:[%s2452_s1 + $0xd0] sm:$0xff] }
   0x6   :  { %1246 = vmatprep.subr.mxu1 %v96_v5  ;;  %1209 = vmatpush3.msra.mxu0 %v48_v6  ;;  %v94_v13 = vld [vmem:[%s2452_s1 + $0x1e0] sm:$0xff]  ;;  %v93_v17 = vld [vmem:[%s2452_s1 + $0x1d8] sm:$0xff]  ;;  %v92_v21 = vld [vmem:[%s2452_s1 + $0x1d0] sm:$0xff] }
   0x7   :  { %1247 = vmatpush3.msra.mxu1 %v80_v7  ;;  %1210 = vmatprep.subr.mxu0 %v63_v8  ;;  %v46_v14 = vld [vmem:[%s2452_s1 + $0x60] sm:$0xff]  ;;  %v45_v18 = vld [vmem:[%s2452_s1 + $0x58] sm:$0xff]  ;;  %v44_v22 = vld [vmem:[%s2452_s1 + $0x50] sm:$0xff] }
   0x8   :  { %1248 = vmatprep.subr.mxu1 %v95_v9  ;;  %v78_v15 = vld [vmem:[%s2452_s1 + $0x160] sm:$0xff]  ;;  %1211 = vmatpush3.msra.mxu0 %v47_v10  ;;  %v77_v19 = vld [vmem:[%s2452_s1 + $0x158] sm:$0xff]  ;;  %v76_v23 = vld [vmem:[%s2452_s1 + $0x150] sm:$0xff] }
   0x9   :  { %1249 = vmatpush3.msra.mxu1 %v79_v11  ;;  %1212 = vmatprep.subr.mxu0 %v62_v12  ;;  %v59_v24 = vld [vmem:[%s2452_s1 + $0xc8] sm:$0xff]  ;;  %v58_v28 = vld [vmem:[%s2452_s1 + $0xc0] sm:$0xff]  ;;  %v57_v32 = vld [vmem:[%s2452_s1 + $0xb8] sm:$0xff] }
   0xa   :  { %1250 = vmatprep.subr.mxu1 %v94_v13  ;;  %1213 = vmatpush3.msra.mxu0 %v46_v14  ;;  %v91_v25 = vld [vmem:[%s2452_s1 + $0x1c8] sm:$0xff]  ;;  %v90_v29 = vld [vmem:[%s2452_s1 + $0x1c0] sm:$0xff]  ;;  %v89_v33 = vld [vmem:[%s2452_s1 + $0x1b8] sm:$0xff] }
   0xb   :  { %1251 = vmatpush3.msra.mxu1 %v78_v15  ;;  %1214 = vmatprep.subr.mxu0 %v61_v16  ;;  %v43_v26 = vld [vmem:[%s2452_s1 + $0x48] sm:$0xff]  ;;  %v42_v30 = vld [vmem:[%s2452_s1 + $0x40] sm:$0xff]  ;;  %v41_v34 = vld [vmem:[%s2452_s1 + $0x38] sm:$0xff] }
   0xc   :  { %1252 = vmatprep.subr.mxu1 %v93_v17  ;;  %1215 = vmatpush3.msra.mxu0 %v45_v18  ;;  %v75_v27 = vld [vmem:[%s2452_s1 + $0x148] sm:$0xff]  ;;  %v74_v31 = vld [vmem:[%s2452_s1 + $0x140] sm:$0xff]  ;;  %v73_v35 = vld [vmem:[%s2452_s1 + $0x138] sm:$0xff] }
   0xd   :  { %1253 = vmatpush3.msra.mxu1 %v77_v19  ;;  %1216 = vmatprep.subr.mxu0 %v60_v20  ;;  %v56_v36 = vld [vmem:[%s2452_s1 + $0xb0] sm:$0xff]  ;;  %v55_v40 = vld [vmem:[%s2452_s1 + $0xa8] sm:$0xff]  ;;  %v54_v44 = vld [vmem:[%s2452_s1 + $0xa0] sm:$0xff] }
   0xe   :  { %1254 = vmatprep.subr.mxu1 %v92_v21  ;;  %1217 = vmatpush3.msra.mxu0 %v44_v22  ;;  %v88_v37 = vld [vmem:[%s2452_s1 + $0x1b0] sm:$0xff]  ;;  %v87_v41 = vld [vmem:[%s2452_s1 + $0x1a8] sm:$0xff]  ;;  %v86_v45 = vld [vmem:[%s2452_s1 + $0x1a0] sm:$0xff] }
   0xf   :  { %1255 = vmatpush3.msra.mxu1 %v76_v23  ;;  %1218 = vmatprep.subr.mxu0 %v59_v24  ;;  %v40_v38 = vld [vmem:[%s2452_s1 + $0x30] sm:$0xff]  ;;  %v39_v42 = vld [vmem:[%s2452_s1 + $0x28] sm:$0xff]  ;;  %v38_v46 = vld [vmem:[%s2452_s1 + $0x20] sm:$0xff] }
  0x10   :  { %1256 = vmatprep.subr.mxu1 %v91_v25  ;;  %1219 = vmatpush3.msra.mxu0 %v43_v26  ;;  %v72_v39 = vld [vmem:[%s2452_s1 + $0x130] sm:$0xff]  ;;  %v71_v43 = vld [vmem:[%s2452_s1 + $0x128] sm:$0xff]  ;;  %v70_v47 = vld [vmem:[%s2452_s1 + $0x120] sm:$0xff] }
  0x11   :  { %1257 = vmatpush3.msra.mxu1 %v75_v27  ;;  %1220 = vmatprep.subr.mxu0 %v58_v28  ;;  %v53_v48 = vld [vmem:[%s2452_s1 + $0x98] sm:$0xff]  ;;  %v52_v52 = vld [vmem:[%s2452_s1 + $0x90] sm:$0xff]  ;;  %v51_v56 = vld [vmem:[%s2452_s1 + $0x88] sm:$0xff] }
  0x12   :  { %1258 = vmatprep.subr.mxu1 %v90_v29  ;;  %1221 = vmatpush3.msra.mxu0 %v42_v30  ;;  %v85_v49 = vld [vmem:[%s2452_s1 + $0x198] sm:$0xff]  ;;  %v84_v53 = vld [vmem:[%s2452_s1 + $0x190] sm:$0xff]  ;;  %v83_v57 = vld [vmem:[%s2452_s1 + $0x188] sm:$0xff] }
  0x13   :  { %1259 = vmatpush3.msra.mxu1 %v74_v31  ;;  %1222 = vmatprep.subr.mxu0 %v57_v32  ;;  %v37_v50 = vld [vmem:[%s2452_s1 + $0x18] sm:$0xff]  ;;  %v36_v54 = vld [vmem:[%s2452_s1 + $0x10] sm:$0xff]  ;;  %v35_v58 = vld [vmem:[%s2452_s1 + $0x8] sm:$0xff] }
  0x14   :  { %1260 = vmatprep.subr.mxu1 %v89_v33  ;;  %1223 = vmatpush3.msra.mxu0 %v41_v34  ;;  %v69_v51 = vld [vmem:[%s2452_s1 + $0x118] sm:$0xff]  ;;  %v68_v55 = vld [vmem:[%s2452_s1 + $0x110] sm:$0xff]  ;;  %v67_v59 = vld [vmem:[%s2452_s1 + $0x108] sm:$0xff] }
  0x15   :  { %1261 = vmatpush3.msra.mxu1 %v73_v35  ;;  %1224 = vmatprep.subr.mxu0 %v56_v36  ;;  %v50_v60 = vld [vmem:[%s2452_s1 + $0x80] sm:$0xff]  ;;  %v17_v63 = vld [vmem:[%s2453_s0 + $0x8] sm:$0xff]  ;;  %v19_v2 = vld [vmem:[%s2453_s0 + $0x18] sm:$0xff] }
  0x16   :  { %1262 = vmatprep.subr.mxu1 %v88_v37  ;;  %1225 = vmatpush3.msra.mxu0 %v40_v38  ;;  %v82_v61 = vld [vmem:[%s2452_s1 + $0x180] sm:$0xff]  ;;  %v129_v3 = vld [vmem:[%s2452_s1 + $0x2f8] sm:$0xff]  ;;  %v18_v5 = vld [vmem:[%s2453_s0 + $0x10] sm:$0xff] }
  0x17   :  { %1263 = vmatpush3.msra.mxu1 %v72_v39  ;;  %1226 = vmatprep.subr.mxu0 %v55_v40  ;;  %v34_v62 = vld [vmem:[%s2452_s1] sm:$0xff]  ;;  %v161_v4 = vld [vmem:[%s2452_s1 + $0x3f8] sm:$0xff]  ;;  %v128_v8 = vld [vmem:[%s2452_s1 + $0x2f0] sm:$0xff] }
  0x18   :  { %1264 = vmatprep.subr.mxu1 %v87_v41  ;;  %1227 = vmatpush3.msra.mxu0 %v39_v42  ;;  %v66_v0 = vld [vmem:[%s2452_s1 + $0x100] sm:$0xff]  ;;  %v113_v6 = vld [vmem:[%s2452_s1 + $0x278] sm:$0xff]  ;;  %v160_v9 = vld [vmem:[%s2452_s1 + $0x3f0] sm:$0xff] }
  0x19   :  { %1265 = vmatpush3.msra.mxu1 %v71_v43  ;;  %1228 = vmatprep.subr.mxu0 %v54_v44  ;;  %v16_v1 = vld [vmem:[%s2453_s0] sm:$0xff]  ;;  %v145_v7 = vld [vmem:[%s2452_s1 + $0x378] sm:$0xff]  ;;  %v112_v10 = vld [vmem:[%s2452_s1 + $0x270] sm:$0xff] }
  0x1a   :  { %1266 = vmatprep.subr.mxu1 %v86_v45  ;;  %1229 = vmatpush3.msra.mxu0 %v38_v46  ;;  %v144_v11 = vld [vmem:[%s2452_s1 + $0x370] sm:$0xff]  ;;  %v127_v12 = vld [vmem:[%s2452_s1 + $0x2e8] sm:$0xff]  ;;  %v126_v16 = vld [vmem:[%s2452_s1 + $0x2e0] sm:$0xff] }
  0x1b   :  { %1267 = vmatpush3.msra.mxu1 %v70_v47  ;;  %1230 = vmatprep.subr.mxu0 %v53_v48  ;;  %v159_v13 = vld [vmem:[%s2452_s1 + $0x3e8] sm:$0xff]  ;;  %v158_v17 = vld [vmem:[%s2452_s1 + $0x3e0] sm:$0xff]  ;;  %v125_v20 = vld [vmem:[%s2452_s1 + $0x2d8] sm:$0xff] }
  0x1c   :  { %1268 = vmatprep.subr.mxu1 %v85_v49  ;;  %1231 = vmatpush3.msra.mxu0 %v37_v50  ;;  %v111_v14 = vld [vmem:[%s2452_s1 + $0x268] sm:$0xff]  ;;  %v110_v18 = vld [vmem:[%s2452_s1 + $0x260] sm:$0xff]  ;;  %v157_v21 = vld [vmem:[%s2452_s1 + $0x3d8] sm:$0xff] }
  0x1d   :  { %1269 = vmatpush3.msra.mxu1 %v69_v51  ;;  %1232 = vmatprep.subr.mxu0 %v52_v52  ;;  %v143_v15 = vld [vmem:[%s2452_s1 + $0x368] sm:$0xff]  ;;  %v142_v19 = vld [vmem:[%s2452_s1 + $0x360] sm:$0xff]  ;;  %v109_v22 = vld [vmem:[%s2452_s1 + $0x258] sm:$0xff] }
  0x1e   :  { %1270 = vmatprep.subr.mxu1 %v84_v53  ;;  %1233 = vmatpush3.msra.mxu0 %v36_v54  ;;  %v141_v23 = vld [vmem:[%s2452_s1 + $0x358] sm:$0xff]  ;;  %v124_v24 = vld [vmem:[%s2452_s1 + $0x2d0] sm:$0xff]  ;;  %v123_v28 = vld [vmem:[%s2452_s1 + $0x2c8] sm:$0xff] }
  0x1f   :  { %1271 = vmatpush3.msra.mxu1 %v68_v55  ;;  %1234 = vmatprep.subr.mxu0 %v51_v56  ;;  %v156_v25 = vld [vmem:[%s2452_s1 + $0x3d0] sm:$0xff]  ;;  %v155_v29 = vld [vmem:[%s2452_s1 + $0x3c8] sm:$0xff]  ;;  %v122_v32 = vld [vmem:[%s2452_s1 + $0x2c0] sm:$0xff] }
  0x20   :  { %1272 = vmatprep.subr.mxu1 %v83_v57  ;;  %1235 = vmatpush3.msra.mxu0 %v35_v58  ;;  %v108_v26 = vld [vmem:[%s2452_s1 + $0x250] sm:$0xff]  ;;  %v107_v30 = vld [vmem:[%s2452_s1 + $0x248] sm:$0xff]  ;;  %v154_v33 = vld [vmem:[%s2452_s1 + $0x3c0] sm:$0xff] }
  0x21   :  { %1273 = vmatpush3.msra.mxu1 %v67_v59  ;;  %1236 = vmatprep.subr.mxu0 %v50_v60  ;;  %v140_v27 = vld [vmem:[%s2452_s1 + $0x350] sm:$0xff]  ;;  %v139_v31 = vld [vmem:[%s2452_s1 + $0x348] sm:$0xff]  ;;  %v106_v34 = vld [vmem:[%s2452_s1 + $0x240] sm:$0xff] }
  0x22   :  { %1274 = vmatprep.subr.mxu1 %v82_v61  ;;  %1237 = vmatpush3.msra.mxu0 %v34_v62  ;;  %v138_v35 = vld [vmem:[%s2452_s1 + $0x340] sm:$0xff]  ;;  %v121_v36 = vld [vmem:[%s2452_s1 + $0x2b8] sm:$0xff]  ;;  %v120_v40 = vld [vmem:[%s2452_s1 + $0x2b0] sm:$0xff] }
  0x23   :  { %231 = vmatprep.mubr.f32.mxu0 %v17_v63  ;;  %1275 = vmatpush3.msra.mxu1 %v66_v0  ;;  %v153_v37 = vld [vmem:[%s2452_s1 + $0x3b8] sm:$0xff]  ;;  %v152_v41 = vld [vmem:[%s2452_s1 + $0x3b0] sm:$0xff]  ;;  %v119_v44 = vld [vmem:[%s2452_s1 + $0x2a8] sm:$0xff] }
  0x24   :  { %232 = vmatmul.mubr.f32.vlgmr.msra.gmra.mxu0 %v16_v1  ;;  %306 = vmatprep.mubr.f32.mxu1 %v19_v2  ;;  %v105_v38 = vld [vmem:[%s2452_s1 + $0x238] sm:$0xff]  ;;  %v104_v42 = vld [vmem:[%s2452_s1 + $0x230] sm:$0xff]  ;;  %v151_v45 = vld [vmem:[%s2452_s1 + $0x3a8] sm:$0xff] }
  0x25   :  { %1282 = vmatprep.subr.mxu0 %v129_v3  ;;  %1320 = vmatprep.subr.mxu1 %v161_v4  ;;  %v137_v39 = vld [vmem:[%s2452_s1 + $0x338] sm:$0xff]  ;;  %v136_v43 = vld [vmem:[%s2452_s1 + $0x330] sm:$0xff]  ;;  %v103_v46 = vld [vmem:[%s2452_s1 + $0x228] sm:$0xff] }
  0x26   :  { %307 = vmatmul.mubr.f32.vlgmr.msra.gmra.mxu1 %v18_v5  ;;  %1283 = vmatpush3.msra.mxu0 %v113_v6  ;;  %v135_v47 = vld [vmem:[%s2452_s1 + $0x328] sm:$0xff]  ;;  %v118_v48 = vld [vmem:[%s2452_s1 + $0x2a0] sm:$0xff]  ;;  %v117_v52 = vld [vmem:[%s2452_s1 + $0x298] sm:$0xff] }
  0x27   :  { %1321 = vmatpush3.msra.mxu1 %v145_v7  ;;  %1284 = vmatprep.subr.mxu0 %v128_v8  ;;  %v150_v49 = vld [vmem:[%s2452_s1 + $0x3a0] sm:$0xff]  ;;  %v149_v53 = vld [vmem:[%s2452_s1 + $0x398] sm:$0xff]  ;;  %v25_v54 = vld [vmem:[%s2453_s0 + $0x50] sm:$0x3] }
  0x28   :  { %1322 = vmatprep.subr.mxu1 %v160_v9  ;;  %1285 = vmatpush3.msra.mxu0 %v112_v10  ;;  %v102_v50 = vld [vmem:[%s2452_s1 + $0x220] sm:$0xff]  ;;  %v101_v55 = vld [vmem:[%s2452_s1 + $0x218] sm:$0xff]  ;;  %v24_v57 = vld [vmem:[%s2453_s0 + $0x48] sm:$0x3] }
  0x29   :  { %1323 = vmatpush3.msra.mxu1 %v144_v11  ;;  %1286 = vmatprep.subr.mxu0 %v127_v12  ;;  %v134_v51 = vld [vmem:[%s2452_s1 + $0x320] sm:$0xff]  ;;  %v133_v56 = vld [vmem:[%s2452_s1 + $0x318] sm:$0xff]  ;;  %v116_v58 = vld [vmem:[%s2452_s1 + $0x290] sm:$0xff] }
  0x2a   :  { %1324 = vmatprep.subr.mxu1 %v159_v13  ;;  %1287 = vmatpush3.msra.mxu0 %v111_v14  ;;  %v148_v59 = vld [vmem:[%s2452_s1 + $0x390] sm:$0xff]  ;;  %v27_v60 = vld [vmem:[%s2453_s0 + $0x60] sm:$0x3]  ;;  %v115_v63 = vld [vmem:[%s2452_s1 + $0x288] sm:$0xff] }
  0x2b   :  { %1325 = vmatpush3.msra.mxu1 %v143_v15  ;;  %1288 = vmatprep.subr.mxu0 %v126_v16  ;;  %v100_v61 = vld [vmem:[%s2452_s1 + $0x210] sm:$0xff]  ;;  %v26_v0 = vld [vmem:[%s2453_s0 + $0x58] sm:$0x3]  ;;  %v147_v1 = vld [vmem:[%s2452_s1 + $0x388] sm:$0xff] }
  0x2c   :  { %1326 = vmatprep.subr.mxu1 %v158_v17  ;;  %1289 = vmatpush3.msra.mxu0 %v110_v18  ;;  %v132_v62 = vld [vmem:[%s2452_s1 + $0x310] sm:$0xff]  ;;  %v99_v2 = vld [vmem:[%s2452_s1 + $0x208] sm:$0xff]  ;;  %v114_v4 = vld [vmem:[%s2452_s1 + $0x280] sm:$0xff] }
  0x2d   :  { %1327 = vmatpush3.msra.mxu1 %v142_v19  ;;  %1290 = vmatprep.subr.mxu0 %v125_v20  ;;  %v131_v3 = vld [vmem:[%s2452_s1 + $0x308] sm:$0xff]  ;;  %v146_v5 = vld [vmem:[%s2452_s1 + $0x380] sm:$0xff]  ;;  %v23_v9 = vld [vmem:[%s2453_s0 + $0x38] sm:$0xff] }
  0x2e   :  { %1328 = vmatprep.subr.mxu1 %v157_v21  ;;  %1291 = vmatpush3.msra.mxu0 %v109_v22  ;;  %v98_v6 = vld [vmem:[%s2452_s1 + $0x200] sm:$0xff]  ;;  %v21_v7 = vld [vmem:[%s2453_s0 + $0x28] sm:$0xff]  ;;  %v22_v11 = vld [vmem:[%s2453_s0 + $0x30] sm:$0xff] }
  0x2f   :  { %1329 = vmatpush3.msra.mxu1 %v141_v23  ;;  %1292 = vmatprep.subr.mxu0 %v124_v24  ;;  %v130_v8 = vld [vmem:[%s2452_s1 + $0x300] sm:$0xff]  ;;  %v29_v12 = vld [vmem:[%s2453_s0 + $0x70] sm:$0x3]  ;;  %v28_v14 = vld [vmem:[%s2453_s0 + $0x68] sm:$0x3] }
  0x30   :  { %1330 = vmatprep.subr.mxu1 %v156_v25  ;;  %1293 = vmatpush3.msra.mxu0 %v108_v26  ;;  %v20_v10 = vld [vmem:[%s2453_s0 + $0x20] sm:$0xff]  ;;  %v30_v15 = vld [vmem:[%s2453_s0 + $0x78] sm:$0x3]  ;;  %v480_v18 = vld [vmem:[%s2452_s1 + $0x470] sm:$0xff] }
  0x31   :  { %1331 = vmatpush3.msra.mxu1 %v140_v27  ;;  %1294 = vmatprep.subr.mxu0 %v123_v28  ;;  %v31_v13 = vld [vmem:[%s2453_s0 + $0x80] sm:$0x3]  ;;  %v481_v17 = vld [vmem:[%s2452_s1 + $0x478] sm:$0xff]  ;;  %v479_v19 = vld [vmem:[%s2452_s1 + $0x468] sm:$0xff] }
  0x32   :  { %1332 = vmatprep.subr.mxu1 %v155_v29  ;;  %1295 = vmatpush3.msra.mxu0 %v107_v30  ;;  %v482_v16 = vld [vmem:[%s2452_s1 + $0x480] sm:$0xff]  ;;  %v477_v21 = vld [vmem:[%s2452_s1 + $0x458] sm:$0xff]  ;;  %v476_v22 = vld [vmem:[%s2452_s1 + $0x450] sm:$0xff] }
  0x33   :  { %1333 = vmatpush3.msra.mxu1 %v139_v31  ;;  %1296 = vmatprep.subr.mxu0 %v122_v32  ;;  %v478_v20 = vld [vmem:[%s2452_s1 + $0x460] sm:$0xff]  ;;  %v475_v23 = vld [vmem:[%s2452_s1 + $0x448] sm:$0xff]  ;;  %v473_v25 = vld [vmem:[%s2452_s1 + $0x438] sm:$0xff] }
  0x34   :  { %1334 = vmatprep.subr.mxu1 %v154_v33  ;;  %1297 = vmatpush3.msra.mxu0 %v106_v34  ;;  %v474_v24 = vld [vmem:[%s2452_s1 + $0x440] sm:$0xff]  ;;  %v472_v26 = vld [vmem:[%s2452_s1 + $0x430] sm:$0xff]  ;;  %v471_v27 = vld [vmem:[%s2452_s1 + $0x428] sm:$0xff] }
  0x35   :  { %1335 = vmatpush3.msra.mxu1 %v138_v35  ;;  %1298 = vmatprep.subr.mxu0 %v121_v36  ;;  %v470_v28 = vld [vmem:[%s2452_s1 + $0x420] sm:$0xff]  ;;  %v469_v29 = vld [vmem:[%s2452_s1 + $0x418] sm:$0xff]  ;;  %v468_v30 = vld [vmem:[%s2452_s1 + $0x410] sm:$0xff] }
  0x36   :  { %1336 = vmatprep.subr.mxu1 %v153_v37  ;;  %1299 = vmatpush3.msra.mxu0 %v105_v38  ;;  %v467_v31 = vld [vmem:[%s2452_s1 + $0x408] sm:$0xff] }
  0x37   :  { %1337 = vmatpush3.msra.mxu1 %v137_v39  ;;  %1300 = vmatprep.subr.mxu0 %v120_v40  ;;  %v1199_v39 = vld [vmem:[%s2452_s1 + $0x400] ss:$0 sm:$0xff] }
  0x38   :  { %1338 = vmatprep.subr.mxu1 %v152_v41  ;;  %1301 = vmatpush3.msra.mxu0 %v104_v42 }
  0x39   :  { %1339 = vmatpush3.msra.mxu1 %v136_v43  ;;  %1302 = vmatprep.subr.mxu0 %v119_v44 }
  0x3a   :  { %1340 = vmatprep.subr.mxu1 %v151_v45  ;;  %1303 = vmatpush3.msra.mxu0 %v103_v46 }
  0x3b   :  { %1341 = vmatpush3.msra.mxu1 %v135_v47  ;;  %1304 = vmatprep.subr.mxu0 %v118_v48 }
  0x3c   :  { %1342 = vmatprep.subr.mxu1 %v150_v49  ;;  %1305 = vmatpush3.msra.mxu0 %v102_v50 }
  0x3d   :  { %1343 = vmatpush3.msra.mxu1 %v134_v51  ;;  %1306 = vmatprep.subr.mxu0 %v117_v52 }
  0x3e   :  { %1344 = vmatprep.subr.mxu1 %v149_v53  ;;  %236 = vmatprep.mubr.f32.mxu0 %v25_v54 }
  0x3f   :  { %1307 = vmatpush3.msra.mxu0 %v101_v55  ;;  %1345 = vmatpush3.msra.mxu1 %v133_v56 }
  0x40   :  { %237 = vmatmul.mubr.f32.gmra.mxu0 %v24_v57  ;;  %1308 = vmatprep.subr.mxu0 %v116_v58 }
  0x41   :  { %1346 = vmatprep.subr.mxu1 %v148_v59  ;;  %311 = vmatprep.mubr.f32.mxu1 %v27_v60 }
  0x42   :  { %1309 = vmatpush3.msra.mxu0 %v100_v61  ;;  %1347 = vmatpush3.msra.mxu1 %v132_v62 }
  0x43   :  { %1310 = vmatprep.subr.mxu0 %v115_v63  ;;  %312 = vmatmul.mubr.f32.gmra.mxu1 %v26_v0 }
  0x44   :  { %1348 = vmatprep.subr.mxu1 %v147_v1  ;;  %1311 = vmatpush3.msra.mxu0 %v99_v2  ;;  %v608_v1 = vld [vmem:[%s2452_s1 + $0x4a8] sm:$0xff] }
  0x45   :  { %1349 = vmatpush3.msra.mxu1 %v131_v3  ;;  %1312 = vmatprep.subr.mxu0 %v114_v4  ;;  %v1200_v2 = vld [vmem:[%s2452_s1 + $0x488] ss:$0 sm:$0xff] }
  0x46   :  { %1350 = vmatprep.subr.mxu1 %v146_v5  ;;  %1313 = vmatpush3.msra.mxu0 %v98_v6 }
  0x47   :  { %381 = vmatprep.mubr.f32.mxu0 %v21_v7  ;;  %1351 = vmatpush3.msra.mxu1 %v130_v8 }
  0x48   :  { %456 = vmatprep.mubr.f32.mxu1 %v23_v9  ;;  %382 = vmatmul.mubr.f32.vlgmr.msra.gmra.mxu0 %v20_v10 }
  0x49   :  { %457 = vmatmul.mubr.f32.vlgmr.msra.gmra.mxu1 %v22_v11  ;;  %386 = vmatprep.mubr.f32.mxu0 %v29_v12  ;;  %v607_v11 = vld [vmem:[%s2452_s1 + $0x4a0] sm:$0xff]  ;;  %v606_v12 = vld [vmem:[%s2452_s1 + $0x498] sm:$0xff] }
  0x4a   :  { %461 = vmatprep.mubr.f32.mxu1 %v31_v13  ;;  %1382 = vmatprep.subr.mxu0 %v482_v16  ;;  %v605_v13 = vld [vmem:[%s2452_s1 + $0x490] sm:$0xff] }
  0x4b   :  { %1383 = vmatpush3.msra.mxu0 %v482_v16  ;;  %1417 = vmatprep.subr.mxu1 %v608_v1  ;;  %v32_v16 = vld [vmem:[%s2453_s0 + $0x40] sm:$0xff] }
  0x4c   :  { %387 = vmatmul.mubr.f32.gmra.mxu0 %v28_v14  ;;  %1384 = vmatprep.subr.mxu0 %v481_v17 }
  0x4d   :  { %462 = vmatmul.mubr.f32.gmra.mxu1 %v30_v15  ;;  %1385 = vmatpush3.msra.mxu0 %v481_v17 }
  0x4e   :  { %1386 = vmatprep.subr.mxu0 %v480_v18  ;;  %1418 = vmatpush3.msra.mxu1 %v608_v1  ;;  %v737_v1 = vld [vmem:[%s2455_s2 + $0x158] sm:$0xff] }
  0x4f   :  { %1387 = vmatpush3.msra.mxu0 %v480_v18  ;;  %1419 = vmatprep.subr.mxu1 %v607_v11 }
  0x50   :  { %1388 = vmatprep.subr.mxu0 %v479_v19  ;;  %1420 = vmatpush3.msra.mxu1 %v607_v11  ;;  %v720_v11 = vld [vmem:[%s2455_s2 + $0xd0] sm:$0xff] }
  0x51   :  { %1389 = vmatpush3.msra.mxu0 %v479_v19  ;;  %1421 = vmatprep.subr.mxu1 %v606_v12  ;;  %v33_v19 = vld [vmem:[%s2453_s0 + $0x88] sm:$0x3] }
  0x52   :  { %1390 = vmatprep.subr.mxu0 %v478_v20  ;;  %1422 = vmatpush3.msra.mxu1 %v606_v12  ;;  %v711_v12 = vld [vmem:[%s2455_s2 + $0x88] sm:$0xff] }
  0x53   :  { %1391 = vmatpush3.msra.mxu0 %v478_v20  ;;  %1423 = vmatprep.subr.mxu1 %v605_v13 }
  0x54   :  { %1392 = vmatprep.subr.mxu0 %v477_v21  ;;  %1424 = vmatpush3.msra.mxu1 %v605_v13  ;;  %v713_v13 = vld [vmem:[%s2455_s2 + $0x98] sm:$0xff] }
  0x55   :  { %1393 = vmatpush3.msra.mxu0 %v477_v21 }
  0x56   :  { %1394 = vmatprep.subr.mxu0 %v476_v22 }
  0x57   :  { %1395 = vmatpush3.msra.mxu0 %v476_v22 }
  0x58   :  { %1396 = vmatprep.subr.mxu0 %v475_v23 }
  0x59   :  { %1397 = vmatpush3.msra.mxu0 %v475_v23  ;;  %v815_v23 = vld [vmem:[%s2455_s2 + $0x3c8] sm:$0xff] }
  0x5a   :  { %1398 = vmatprep.subr.mxu0 %v474_v24  ;;  %867 = vmatprep.subr.mxu1 %v815_v23  ;;  %v696_v23 = vld [vmem:[%s2455_s2 + $0x10] sm:$0xff] }
  0x5b   :  { %1399 = vmatpush3.msra.mxu0 %v474_v24  ;;  %v817_v24 = vld [vmem:[%s2455_s2 + $0x3d8] sm:$0xff] }
  0x5c   :  { %1400 = vmatprep.subr.mxu0 %v473_v25 }
  0x5d   :  { %1401 = vmatpush3.msra.mxu0 %v473_v25  ;;  %v816_v25 = vld [vmem:[%s2455_s2 + $0x3d0] sm:$0xff] }
  0x5e   :  { %1402 = vmatprep.subr.mxu0 %v472_v26 }
  0x5f   :  { %1403 = vmatpush3.msra.mxu0 %v472_v26  ;;  %v809_v26 = vld [vmem:[%s2455_s2 + $0x398] sm:$0xff] }
  0x60   :  { %1404 = vmatprep.subr.mxu0 %v471_v27 }
  0x61   :  { %1405 = vmatpush3.msra.mxu0 %v471_v27 }
  0x62   :  { %1406 = vmatprep.subr.mxu0 %v470_v28 }
  0x63   :  { %1407 = vmatpush3.msra.mxu0 %v470_v28  ;;  %v814_v28 = vld [vmem:[%s2455_s2 + $0x3c0] sm:$0xff] }
  0x64   :  { %1408 = vmatprep.subr.mxu0 %v469_v29 }
  0x65   :  { %1409 = vmatpush3.msra.mxu0 %v469_v29  ;;  %v808_v29 = vld [vmem:[%s2455_s2 + $0x390] sm:$0xff] }
  0x66   :  { %1410 = vmatprep.subr.mxu0 %v468_v30 }
  0x67   :  { %1411 = vmatpush3.msra.mxu0 %v468_v30  ;;  %v807_v30 = vld [vmem:[%s2455_s2 + $0x388] sm:$0xff] }
  0x68   :  { %1412 = vmatprep.subr.mxu0 %v467_v31 }
  0x69   :  { %1413 = vmatpush3.msra.mxu0 %v467_v31  ;;  %v801_v31 = vld [vmem:[%s2455_s2 + $0x358] sm:$0xff] }
  0x6a   :  { %944 = vmatprep.subr.mxu0 %v817_v24  ;;  %v819_v24 = vld [vmem:[%s2455_s2 + $0x3e8] sm:$0xff] }
  0xe4   :  { %v1238_v32 = vpop.f32.mrf.mxu0 }
  0xe6   :  { %v1276_v33 = vpop.f32.mrf.mxu1  ;;  %v1239_v34 = vpop.f32.mrf.mxu0 }
  0xe7   :  { %v1240_v37 = vadd.f32 %v1239_v34, %v1238_v32  ;;  %v806_v32 = vld [vmem:[%s2455_s2 + $0x380] sm:$0xff]  ;;  %v799_v34 = vld [vmem:[%s2455_s2 + $0x348] sm:$0xff] }
  0xe8   :  { %v1277_v36 = vpop.f32.mrf.mxu1 }
  0xe9   :  { %v234_v42 = vadd.f32 %v1240_v37, %v1199_v39  ;;  %v1278_v43 = vadd.f32 %v1277_v36, %v1276_v33  ;;  %v800_v33 = vld [vmem:[%s2455_s2 + $0x350] sm:$0xff]  ;;  %v793_v36 = vld [vmem:[%s2455_s2 + $0x318] sm:$0xff]  ;;  %v791_v37 = vld [vmem:[%s2455_s2 + $0x308] sm:$0xff] }
  0xeb   :  { %v309_v49 = vadd.f32 %v1278_v43, %v234_v42  ;;  %v782_v42 = vld [vmem:[%s2455_s2 + $0x2c0] sm:$0xff]  ;;  %v784_v43 = vld [vmem:[%s2455_s2 + $0x2d0] sm:$0xff] }
 0x100   :  { %v1241_v35 = vpop.f32.mrf.mxu0 }
 0x102   :  { %v1242_v40 = vpop.f32.mrf.mxu0 }
 0x103   :  { %v1279_v38 = vpop.f32.mrf.mxu1  ;;  %v1243_v44 = vadd.f32 %v1242_v40, %v1241_v35  ;;  %v798_v35 = vld [vmem:[%s2455_s2 + $0x340] sm:$0xff]  ;;  %v785_v40 = vld [vmem:[%s2455_s2 + $0x2d8] sm:$0xff] }
 0x105   :  { %v1280_v41 = vpop.f32.mrf.mxu1  ;;  %v239_v50 = vadd.f32 %v1243_v44, %v1199_v39  ;;  %v790_v39 = vld [vmem:[%s2455_s2 + $0x300] sm:$0xff]  ;;  %v775_v44 = vld [vmem:[%s2455_s2 + $0x288] sm:$0xff] }
 0x106   :  { %v1281_v51 = vadd.f32 %v1280_v41, %v1279_v38  ;;  %v792_v38 = vld [vmem:[%s2455_s2 + $0x310] sm:$0xff]  ;;  %v783_v41 = vld [vmem:[%s2455_s2 + $0x2c8] sm:$0xff] }
 0x108   :  { %v1314_v45 = vpop.f32.mrf.mxu0  ;;  %v314_v59 = vadd.f32 %v1281_v51, %v239_v50  ;;  %v766_v50 = vld [vmem:[%s2455_s2 + $0x240] sm:$0xff]  ;;  %v768_v51 = vld [vmem:[%s2455_s2 + $0x250] sm:$0xff] }
 0x109   :  { %v1352_v46 = vpop.f32.mrf.mxu1 }
 0x10a   :  { %v1315_v47 = vpop.f32.mrf.mxu0 }
 0x10b   :  { %v1353_v48 = vpop.f32.mrf.mxu1  ;;  %v1316_v52 = vadd.f32 %v1315_v47, %v1314_v45  ;;  %v777_v45 = vld [vmem:[%s2455_s2 + $0x298] sm:$0xff]  ;;  %v776_v47 = vld [vmem:[%s2455_s2 + $0x290] sm:$0xff] }
 0x10c   :  { %v1317_v53 = vpop.f32.mrf.mxu0  ;;  %v1354_v56 = vadd.f32 %v1353_v48, %v1352_v46  ;;  %v774_v46 = vld [vmem:[%s2455_s2 + $0x280] sm:$0xff]  ;;  %v767_v48 = vld [vmem:[%s2455_s2 + $0x248] sm:$0xff] }
 0x10d   :  { %v1355_v54 = vpop.f32.mrf.mxu1  ;;  %v384_v55 = vadd.f32 %v1316_v52, %v309_v49  ;;  %v769_v49 = vld [vmem:[%s2455_s2 + $0x258] sm:$0xff]  ;;  %v759_v52 = vld [vmem:[%s2455_s2 + $0x208] sm:$0xff] }
 0x10e   :  { %v1318_v57 = vpop.f32.mrf.mxu0 }
 0x10f   :  { %v1356_v58 = vpop.f32.mrf.mxu1  ;;  %v459_v60 = vadd.f32 %v1354_v56, %v384_v55  ;;  %v1319_v61 = vadd.f32 %v1318_v57, %v1317_v53  ;;  %v761_v53 = vld [vmem:[%s2455_s2 + $0x218] sm:$0xff]  ;;  %v760_v55 = vld [vmem:[%s2455_s2 + $0x210] sm:$0xff]  ;;  %v751_v56 = vld [vmem:[%s2455_s2 + $0x1c8] sm:$0xff] }
 0x110   :  { %v1357_v63 = vadd.f32 %v1356_v58, %v1355_v54  ;;  %v758_v54 = vld [vmem:[%s2455_s2 + $0x200] sm:$0xff]  ;;  %v753_v57 = vld [vmem:[%s2455_s2 + $0x1d8] sm:$0xff] }
 0x111   :  { %v389_v62 = vadd.f32 %v1319_v61, %v314_v59  ;;  %1414 = vmatprep.mubr.f32.mxu0 %v459_v60  ;;  %v750_v58 = vld [vmem:[%s2455_s2 + $0x1c0] sm:$0xff]  ;;  %v752_v59 = vld [vmem:[%s2455_s2 + $0x1d0] sm:$0xff]  ;;  %v743_v60 = vld [vmem:[%s2455_s2 + $0x188] sm:$0xff] }
 0x112   :  { %v745_v61 = vld [vmem:[%s2455_s2 + $0x198] sm:$0xff] }
 0x113   :  { %v464_v0 = vadd.f32 %v1357_v63, %v389_v62  ;;  %v742_v62 = vld [vmem:[%s2455_s2 + $0x180] sm:$0xff]  ;;  %v744_v63 = vld [vmem:[%s2455_s2 + $0x190] sm:$0xff] }
 0x115   :  { %1415 = vmatmul.mubr.f32.vlgmr.msra.gmra.mxu0 %v464_v0  ;;  %v735_v0 = vld [vmem:[%s2455_s2 + $0x148] sm:$0xff] }
 0x116   :  { %945 = vmatpush1.msra.mxu0 %v816_v25  ;;  %v821_v25 = vld [vmem:[%s2455_s2 + $0x3f8] sm:$0xff] }
 0x117   :  { %946 = vmatprep.subr.mxu0 %v809_v26  ;;  %v1437_v26 = vmov 0.0  }
 0x118   :  { %947 = vmatpush1.msra.mxu0 %v808_v29  ;;  %1008 = vmatprep.mubr.f32.mxu0 %v1437_v26 }
 0x119   :  { %948 = vmatprep.subr.mxu0 %v801_v31 }
 0x11a   :  { %949 = vmatpush1.msra.mxu0 %v800_v33 }
 0x11b   :  { %950 = vmatprep.subr.mxu0 %v793_v36  ;;  %v820_v36 = vld [vmem:[%s2455_s2 + $0x3f0] sm:$0xff] }
 0x11c   :  { %951 = vmatpush1.msra.mxu0 %v792_v38  ;;  %v813_v38 = vld [vmem:[%s2455_s2 + $0x3b8] sm:$0xff] }
 0x11d   :  { %952 = vmatprep.subr.mxu0 %v785_v40  ;;  %v812_v40 = vld [vmem:[%s2455_s2 + $0x3b0] sm:$0xff] }
 0x11e   :  { %953 = vmatpush1.msra.mxu0 %v784_v43 }
 0x11f   :  { %954 = vmatprep.subr.mxu0 %v777_v45  ;;  %v804_v45 = vld [vmem:[%s2455_s2 + $0x370] sm:$0xff] }
 0x120   :  { %955 = vmatpush1.msra.mxu0 %v776_v47  ;;  %v797_v47 = vld [vmem:[%s2455_s2 + $0x338] sm:$0xff] }
 0x121   :  { %956 = vmatprep.subr.mxu0 %v769_v49  ;;  %v796_v49 = vld [vmem:[%s2455_s2 + $0x330] sm:$0xff] }
 0x122   :  { %957 = vmatpush1.msra.mxu0 %v768_v51  ;;  %v789_v51 = vld [vmem:[%s2455_s2 + $0x2f8] sm:$0xff] }
 0x123   :  { %958 = vmatprep.subr.mxu0 %v761_v53  ;;  %v788_v53 = vld [vmem:[%s2455_s2 + $0x2f0] sm:$0xff] }
 0x124   :  { %959 = vmatpush1.msra.mxu0 %v760_v55  ;;  %v781_v55 = vld [vmem:[%s2455_s2 + $0x2b8] sm:$0xff] }
 0x125   :  { %960 = vmatprep.subr.mxu0 %v753_v57  ;;  %v780_v57 = vld [vmem:[%s2455_s2 + $0x2b0] sm:$0xff] }
 0x126   :  { %961 = vmatpush1.msra.mxu0 %v752_v59  ;;  %v773_v59 = vld [vmem:[%s2455_s2 + $0x278] sm:$0xff] }
 0x127   :  { %962 = vmatprep.subr.mxu0 %v745_v61  ;;  %v772_v61 = vld [vmem:[%s2455_s2 + $0x270] sm:$0xff] }
 0x128   :  { %963 = vmatpush1.msra.mxu0 %v744_v63  ;;  %v765_v63 = vld [vmem:[%s2455_s2 + $0x238] sm:$0xff] }
 0x129   :  { %964 = vmatprep.subr.mxu0 %v737_v1  ;;  %v764_v1 = vld [vmem:[%s2455_s2 + $0x230] sm:$0xff] }
 0x1d5   :  { %v1416_v3 = vpop.f32.mrf.mxu0 }
 0x1d6   :  { %v560_v4 = vadd.f32 %v1416_v3, %v1200_v2  ;;  %v736_v3 = vld [vmem:[%s2455_s2 + $0x150] sm:$0xff] }
 0x1d7   :  { %v554_v5 = vpop.f32.mrf.mxu0  ;;  %965 = vmatpush1.msra.mxu0 %v736_v3  ;;  %v757_v3 = vld [vmem:[%s2455_s2 + $0x1f8] sm:$0xff] }
 0x1d8   :  { %564 = vst [vmem:[%s2454_s4 + $0x8] sm:$0x3] %v560_v4  ;;  %v555_v6 = vadd.f32 %v1200_v2, %v554_v5  ;;  %v566_v7 = vmul.f32 0.5, %v560_v4  ;;  %v734_v2 = vld [vmem:[%s2455_s2 + $0x140] sm:$0xff]  ;;  %v729_v5 = vld [vmem:[%s2455_s2 + $0x118] sm:$0xff] }
 0x1d9   :  { %966 = vmatprep.subr.mxu0 %v729_v5  ;;  %v756_v5 = vld [vmem:[%s2455_s2 + $0x1f0] sm:$0xff] }
 0x1da   :  { %563 = vst [vmem:[%s2454_s4] sm:$0xff] %v555_v6  ;;  %v565_v8 = vmul.f32 0.5, %v555_v6  ;;  %v569_v10 = vmul.f32 1.442695, %v566_v7  ;;  %v728_v7 = vld [vmem:[%s2455_s2 + $0x110] sm:$0xff] }
 0x1db   :  { %967 = vmatpush1.msra.mxu0 %v728_v7  ;;  %v749_v7 = vld [vmem:[%s2455_s2 + $0x1b8] sm:$0xff] }
 0x1dc   :  { %v567_v9 = vmul.f32 1.442695, %v565_v8  ;;  %v719_v8 = vld [vmem:[%s2455_s2 + $0xc8] sm:$0xff] }
 0x1de   :  { %1431 = vpow2.f32 %v567_v9  ;;  %v721_v9 = vld [vmem:[%s2455_s2 + $0xd8] sm:$0xff] }
 0x1df   :  { %1433 = vpow2.f32 %v569_v10  ;;  %v718_v10 = vld [vmem:[%s2455_s2 + $0xc0] sm:$0xff]  ;;  %968 = vmatprep.subr.mxu0 %v721_v9  ;;  %v748_v9 = vld [vmem:[%s2455_s2 + $0x1b0] sm:$0xff] }
 0x1e0   :  { %969 = vmatpush1.msra.mxu0 %v720_v11  ;;  %v741_v11 = vld [vmem:[%s2455_s2 + $0x178] sm:$0xff] }
 0x1e1   :  { %970 = vmatprep.subr.mxu0 %v713_v13  ;;  %v740_v13 = vld [vmem:[%s2455_s2 + $0x170] sm:$0xff] }
 0x1eb   :  { %v1432_v14 = vpop.eup %1431 }
 0x1ec   :  { %573 = vrot.lane.b32.xlu0 %v1432_v14, %s1435_s13  ;;  %v1434_v15 = vpop.eup %1433 }
 0x1f0   :  { %575 = vrot.lane.b32.xlu0 %v1434_v15, %s1435_s13 }
 0x1f4   :  { %595 = vrot.lane.b32.xlu0 %v1432_v14, %s1436_s14  ;;  %v710_v14 = vld [vmem:[%s2455_s2 + $0x80] sm:$0xff] }
 0x25e   :  { %v574_v17 = vpop.permute.xlu0 %573 }
 0x25f   :  { %v579_v18 = vmul.f32 %v574_v17, %v32_v16  ;;  %v703_v16 = vld [vmem:[%s2455_s2 + $0x48] sm:$0xff]  ;;  %v705_v17 = vld [vmem:[%s2455_s2 + $0x58] sm:$0xff] }
 0x261   :  { %v581_v20 = vadd.f32 %v579_v18, %v555_v6  ;;  %v726_v6 = vld [vmem:[%s2455_s2 + $0x100] sm:$0xff] }
 0x262   :  { %v576_v21 = vpop.permute.xlu0 %575  ;;  %v702_v18 = vld [vmem:[%s2455_s2 + $0x40] sm:$0xff] }
 0x263   :  { %v580_v22 = vmul.f32 %v576_v21, %v33_v19  ;;  %1425 = vmatprep.mubr.msk.f32.mxu1 %vm614_vm0, %v581_v20  ;;  %v704_v19 = vld [vmem:[%s2455_s2 + $0x50] sm:$0xff]  ;;  %v697_v21 = vld [vmem:[%s2455_s2 + $0x18] sm:$0xff] }
 0x265   :  { %v582_v27 = vadd.f32 %v580_v22, %v560_v4  ;;  %v727_v4 = vld [vmem:[%s2455_s2 + $0x108] sm:$0xff]  ;;  %v694_v22 = vld [vmem:[%s2455_s2] sm:$0xff] }
 0x266   :  { %v596_v29 = vpop.permute.xlu0 %595 }
 0x267   :  { %587 = vrot.lane.b32.xlu1 %v582_v27, %s1436_s14  ;;  %1426 = vmatmul.mubr.msk.f32.vlgmr.msra.gmra.mxu1 %vm614_vm0, %v582_v27 }
 0x268   :  { %868 = vmatpush1.msra.mxu1 %v814_v28  ;;  %931 = vmatprep.mubr.f32.mxu1 %v1437_v26 }
 0x269   :  { %869 = vmatprep.subr.mxu1 %v807_v30 }
 0x26a   :  { %870 = vmatpush1.msra.mxu1 %v806_v32  ;;  %v1201_v32 = vld [vmem:[%s2452_s1 + $0x4b0] ss:$0 sm:$0xff] }
 0x26b   :  { %585 = vrot.lane.b32.xlu1 %v581_v20, %s1436_s14  ;;  %871 = vmatprep.subr.mxu1 %v799_v34  ;;  %v695_v20 = vld [vmem:[%s2455_s2 + $0x8] sm:$0xff] }
 0x26c   :  { %872 = vmatpush1.msra.mxu1 %v798_v35  ;;  %v818_v35 = vld [vmem:[%s2455_s2 + $0x3e0] sm:$0xff] }
 0x26d   :  { %873 = vmatprep.subr.mxu1 %v791_v37  ;;  %v811_v37 = vld [vmem:[%s2455_s2 + $0x3a8] sm:$0xff] }
 0x26e   :  { %874 = vmatpush1.msra.mxu1 %v790_v39  ;;  %v810_v39 = vld [vmem:[%s2455_s2 + $0x3a0] sm:$0xff] }
 0x26f   :  { %597 = vrot.lane.b32.xlu1 %v1434_v15, %s1436_s14  ;;  %875 = vmatprep.subr.mxu1 %v783_v41  ;;  %v712_v15 = vld [vmem:[%s2455_s2 + $0x90] sm:$0xff]  ;;  %v803_v41 = vld [vmem:[%s2455_s2 + $0x368] sm:$0xff] }
 0x270   :  { %876 = vmatpush1.msra.mxu1 %v782_v42  ;;  %971 = vmatpush1.msra.mxu0 %v712_v15  ;;  %v805_v42 = vld [vmem:[%s2455_s2 + $0x378] sm:$0xff] }
 0x271   :  { %877 = vmatprep.subr.mxu1 %v775_v44  ;;  %972 = vmatprep.subr.mxu0 %v705_v17  ;;  %v802_v44 = vld [vmem:[%s2455_s2 + $0x360] sm:$0xff]  ;;  %v733_v15 = vld [vmem:[%s2455_s2 + $0x138] sm:$0xff]  ;;  %v732_v17 = vld [vmem:[%s2455_s2 + $0x130] sm:$0xff] }
 0x272   :  { %878 = vmatpush1.msra.mxu1 %v774_v46  ;;  %973 = vmatpush1.msra.mxu0 %v704_v19  ;;  %v795_v46 = vld [vmem:[%s2455_s2 + $0x328] sm:$0xff]  ;;  %v725_v19 = vld [vmem:[%s2455_s2 + $0xf8] sm:$0xff] }
 0x273   :  { %879 = vmatprep.subr.mxu1 %v767_v48  ;;  %974 = vmatprep.subr.mxu0 %v697_v21  ;;  %v794_v48 = vld [vmem:[%s2455_s2 + $0x320] sm:$0xff]  ;;  %v724_v21 = vld [vmem:[%s2455_s2 + $0xf0] sm:$0xff] }
 0x274   :  { %880 = vmatpush1.msra.mxu1 %v766_v50  ;;  %975 = vmatpush1.msra.mxu0 %v696_v23  ;;  %v787_v50 = vld [vmem:[%s2455_s2 + $0x2e8] sm:$0xff]  ;;  %v717_v23 = vld [vmem:[%s2455_s2 + $0xb8] sm:$0xff] }
 0x275   :  { %881 = vmatprep.subr.mxu1 %v759_v52  ;;  %1098 = vmatprep.subr.mxu0 %v821_v25  ;;  %v786_v52 = vld [vmem:[%s2455_s2 + $0x2e0] sm:$0xff]  ;;  %v716_v25 = vld [vmem:[%s2455_s2 + $0xb0] sm:$0xff] }
 0x276   :  { %882 = vmatpush1.msra.mxu1 %v758_v54  ;;  %v779_v54 = vld [vmem:[%s2455_s2 + $0x2a8] sm:$0xff] }
 0x277   :  { %883 = vmatprep.subr.mxu1 %v751_v56  ;;  %v778_v56 = vld [vmem:[%s2455_s2 + $0x2a0] sm:$0xff] }
 0x278   :  { %884 = vmatpush1.msra.mxu1 %v750_v58  ;;  %v771_v58 = vld [vmem:[%s2455_s2 + $0x268] sm:$0xff] }
 0x279   :  { %885 = vmatprep.subr.mxu1 %v743_v60  ;;  %v770_v60 = vld [vmem:[%s2455_s2 + $0x260] sm:$0xff] }
 0x27a   :  { %886 = vmatpush1.msra.mxu1 %v742_v62  ;;  %v763_v62 = vld [vmem:[%s2455_s2 + $0x228] sm:$0xff] }
 0x27b   :  { %887 = vmatprep.subr.mxu1 %v735_v0  ;;  %v762_v0 = vld [vmem:[%s2455_s2 + $0x220] sm:$0xff] }
 0x27c   :  { %888 = vmatpush1.msra.mxu1 %v734_v2  ;;  %v755_v2 = vld [vmem:[%s2455_s2 + $0x1e8] sm:$0xff] }
 0x27d   :  { %889 = vmatprep.subr.mxu1 %v727_v4  ;;  %v754_v4 = vld [vmem:[%s2455_s2 + $0x1e0] sm:$0xff] }
 0x27e   :  { %890 = vmatpush1.msra.mxu1 %v726_v6  ;;  %v747_v6 = vld [vmem:[%s2455_s2 + $0x1a8] sm:$0xff] }
 0x27f   :  { %891 = vmatprep.subr.mxu1 %v719_v8  ;;  %v746_v8 = vld [vmem:[%s2455_s2 + $0x1a0] sm:$0xff] }
 0x280   :  { %892 = vmatpush1.msra.mxu1 %v718_v10  ;;  %v739_v10 = vld [vmem:[%s2455_s2 + $0x168] sm:$0xff] }
 0x281   :  { %893 = vmatprep.subr.mxu1 %v711_v12  ;;  %v738_v12 = vld [vmem:[%s2455_s2 + $0x160] sm:$0xff] }
 0x282   :  { %894 = vmatpush1.msra.mxu1 %v710_v14  ;;  %v731_v14 = vld [vmem:[%s2455_s2 + $0x128] sm:$0xff] }
 0x283   :  { %895 = vmatprep.subr.mxu1 %v703_v16  ;;  %v730_v16 = vld [vmem:[%s2455_s2 + $0x120] sm:$0xff] }
 0x284   :  { %896 = vmatpush1.msra.mxu1 %v702_v18  ;;  %v723_v18 = vld [vmem:[%s2455_s2 + $0xe8] sm:$0xff] }
 0x285   :  { %897 = vmatprep.subr.mxu1 %v695_v20  ;;  %v722_v20 = vld [vmem:[%s2455_s2 + $0xe0] sm:$0xff] }
 0x286   :  { %898 = vmatpush1.msra.mxu1 %v694_v22  ;;  %v715_v22 = vld [vmem:[%s2455_s2 + $0xa8] sm:$0xff] }
 0x287   :  { %1021 = vmatprep.subr.mxu1 %v819_v24  ;;  %v714_v24 = vld [vmem:[%s2455_s2 + $0xa0] sm:$0xff] }
 0x2d9   :  { %v588_v27 = vpop.permute.xlu1 %587 }
 0x2da   :  { %594 = vst.msk [vmem:[%s2454_s4 + $0x8] sm:$0x3] %vm593_vm1, %v588_v27  ;;  %v707_v27 = vld [vmem:[%s2455_s2 + $0x68] sm:$0xff] }
 0x2dd   :  { %v586_v28 = vpop.permute.xlu1 %585 }
 0x2de   :  { %592 = vst.msk [vmem:[%s2454_s4] sm:$0xff] %vm591_vm2, %v586_v28  ;;  %v709_v28 = vld [vmem:[%s2455_s2 + $0x78] sm:$0xff] }
 0x2df   :  { %602 = vst.msk [vmem:[%s2454_s4] sm:$0xff] %vm601_vm3, %v596_v29  ;;  %v706_v29 = vld [vmem:[%s2455_s2 + $0x60] sm:$0xff] }
 0x2e1   :  { %v598_v30 = vpop.permute.xlu1 %597 }
 0x2e2   :  { %604 = vst.msk [vmem:[%s2454_s4 + $0x8] sm:$0x3] %vm603_vm4, %v598_v30  ;;  %v708_v30 = vld [vmem:[%s2455_s2 + $0x70] sm:$0xff] }
 0x327   :  { %v1427_v31 = vpop.f32.mrf.mxu1 }
 0x328   :  { %v2222_v43 = vadd.f32 %v1427_v31, %v1201_v32  ;;  %v699_v31 = vld [vmem:[%s2455_s2 + $0x28] sm:$0xff] }
 0x329   :  { %v685_v33 = vpop.f32.mrf.mxu1 }
 0x32a   :  { %v2194_v34 = vadd.f32 %v1201_v32, %v685_v33  ;;  %v701_v32 = vld [vmem:[%s2455_s2 + $0x38] sm:$0xff]  ;;  %v698_v33 = vld [vmem:[%s2455_s2 + $0x20] sm:$0xff] }
 0x32c   :  { %932 = vmatmul.mubr.f32.vlgmr.msra.gmra.mxu1 %v2194_v34  ;;  %1009 = vmatmul.mubr.f32.vlgmr.msra.gmra.mxu0 %v2194_v34 }
 0x32d   :  { %1022 = vmatpush1.msra.mxu1 %v818_v35  ;;  %1099 = vmatpush1.msra.mxu0 %v820_v36  ;;  %v700_v35 = vld [vmem:[%s2455_s2 + $0x30] sm:$0xff]  ;;  %v827_v36 = vlaneseq }
 0x32e   :  { %1023 = vmatprep.subr.mxu1 %v811_v37  ;;  %1100 = vmatprep.subr.mxu0 %v813_v38  ;;  %v1204_v38 = vld [vmem:[%s2455_s2 + $0x400] ss:$8 sm:$0xf] }
 0x32f   :  { %1024 = vmatpush1.msra.mxu1 %v810_v39  ;;  %1101 = vmatpush1.msra.mxu0 %v812_v40  ;;  %v828_v37 = vshrl.u32 %v827_v36, 7  ;;  %v1205_v39 = vld [vmem:[%s2455_s2 + $0x400] ss:$8 sm:$0xf0] }
 0x330   :  { %937 = vmatprep.mubr.f32.mxu1 %v1437_v26  ;;  %1014 = vmatprep.mubr.f32.mxu0 %v1437_v26  ;;  %v825_v40 = vor.u32 %v1205_v39, %v1204_v38 }
 0x331   :  { %1025 = vmatprep.subr.mxu1 %v803_v41  ;;  %1102 = vmatprep.subr.mxu0 %v805_v42  ;;  %v837_v41 = vsub.s32 2, %v828_v37  ;;  %v833_v42 = vsub.s32 1, %v828_v37 }
 0x332   :  { %938 = vmatmul.mubr.f32.gmra.mxu1 %v2222_v43  ;;  %1015 = vmatmul.mubr.f32.gmra.mxu0 %v2222_v43 }
 0x333   :  { %1026 = vmatpush1.msra.mxu1 %v802_v44  ;;  %1103 = vmatpush1.msra.mxu0 %v804_v45  ;;  %v841_v44 = vsub.s32 3, %v828_v37  ;;  %v838_v45 = vrot.slane %v825_v40, %v837_v41 }
 0x334   :  { %1027 = vmatprep.subr.mxu1 %v795_v46  ;;  %1104 = vmatprep.subr.mxu0 %v797_v47  ;;  %v834_v46 = vrot.slane %v825_v40, %v833_v42 }
 0x335   :  { %1028 = vmatpush1.msra.mxu1 %v794_v48  ;;  %1105 = vmatpush1.msra.mxu0 %v796_v49  ;;  %v842_v47 = vrot.slane %v825_v40, %v841_v44 }
 0x336   :  { %1029 = vmatprep.subr.mxu1 %v787_v50  ;;  %1106 = vmatprep.subr.mxu0 %v789_v51 }
 0x337   :  { %1030 = vmatpush1.msra.mxu1 %v786_v52  ;;  %1107 = vmatpush1.msra.mxu0 %v788_v53 }
 0x338   :  { %1031 = vmatprep.subr.mxu1 %v779_v54  ;;  %1108 = vmatprep.subr.mxu0 %v781_v55 }
 0x339   :  { %1032 = vmatpush1.msra.mxu1 %v778_v56  ;;  %1109 = vmatpush1.msra.mxu0 %v780_v57 }
 0x33a   :  { %1033 = vmatprep.subr.mxu1 %v771_v58  ;;  %1110 = vmatprep.subr.mxu0 %v773_v59 }
 0x33b   :  { %1034 = vmatpush1.msra.mxu1 %v770_v60  ;;  %1111 = vmatpush1.msra.mxu0 %v772_v61 }
 0x33c   :  { %1035 = vmatprep.subr.mxu1 %v763_v62  ;;  %1112 = vmatprep.subr.mxu0 %v765_v63  ;;  %v845_v63 = vsub.s32 4, %v828_v37 }
 0x33d   :  { %1036 = vmatpush1.msra.mxu1 %v762_v0  ;;  %1113 = vmatpush1.msra.mxu0 %v764_v1  ;;  %v853_v0 = vsub.s32 6, %v828_v37  ;;  %v849_v1 = vsub.s32 5, %v828_v37 }
 0x33e   :  { %1037 = vmatprep.subr.mxu1 %v755_v2  ;;  %1114 = vmatprep.subr.mxu0 %v757_v3  ;;  %v857_v2 = vsub.s32 7, %v828_v37  ;;  %v846_v3 = vrot.slane %v825_v40, %v845_v63 }
 0x33f   :  { %1038 = vmatpush1.msra.mxu1 %v754_v4  ;;  %1115 = vmatpush1.msra.mxu0 %v756_v5  ;;  %v854_v4 = vrot.slane %v825_v40, %v853_v0  ;;  %v850_v5 = vrot.slane %v825_v40, %v849_v1 }
 0x340   :  { %1039 = vmatprep.subr.mxu1 %v747_v6  ;;  %1116 = vmatprep.subr.mxu0 %v749_v7  ;;  %v858_v6 = vrot.slane %v825_v40, %v857_v2 }
 0x341   :  { %1040 = vmatpush1.msra.mxu1 %v746_v8  ;;  %1117 = vmatpush1.msra.mxu0 %v748_v9 }
 0x342   :  { %1041 = vmatprep.subr.mxu1 %v739_v10  ;;  %1118 = vmatprep.subr.mxu0 %v741_v11 }
 0x343   :  { %1042 = vmatpush1.msra.mxu1 %v738_v12  ;;  %1119 = vmatpush1.msra.mxu0 %v740_v13 }
 0x344   :  { %1043 = vmatprep.subr.mxu1 %v731_v14  ;;  %1120 = vmatprep.subr.mxu0 %v733_v15 }
 0x345   :  { %1044 = vmatpush1.msra.mxu1 %v730_v16  ;;  %1121 = vmatpush1.msra.mxu0 %v732_v17 }
 0x346   :  { %1045 = vmatprep.subr.mxu1 %v723_v18  ;;  %1122 = vmatprep.subr.mxu0 %v725_v19 }
 0x347   :  { %1046 = vmatpush1.msra.mxu1 %v722_v20  ;;  %1123 = vmatpush1.msra.mxu0 %v724_v21 }
 0x348   :  { %1047 = vmatprep.subr.mxu1 %v715_v22  ;;  %1124 = vmatprep.subr.mxu0 %v717_v23 }
 0x349   :  { %1048 = vmatpush1.msra.mxu1 %v714_v24  ;;  %1125 = vmatpush1.msra.mxu0 %v716_v25 }
 0x34a   :  { %1049 = vmatprep.subr.mxu1 %v707_v27  ;;  %1126 = vmatprep.subr.mxu0 %v709_v28 }
 0x34b   :  { %1050 = vmatpush1.msra.mxu1 %v706_v29  ;;  %1127 = vmatpush1.msra.mxu0 %v708_v30 }
 0x34c   :  { %1051 = vmatprep.subr.mxu1 %v699_v31  ;;  %1128 = vmatprep.subr.mxu0 %v701_v32 }
 0x34d   :  { %1052 = vmatpush1.msra.mxu1 %v698_v33  ;;  %1085 = vmatprep.mubr.f32.mxu1 %v1437_v26 }
 0x34e   :  { %1129 = vmatpush1.msra.mxu0 %v700_v35  ;;  %1162 = vmatprep.mubr.f32.mxu0 %v1437_v26 }
 0x34f   :  { %1086 = vmatmul.mubr.f32.vlgmr.msra.gmra.mxu1 %v2194_v34  ;;  %1163 = vmatmul.mubr.f32.vlgmr.msra.gmra.mxu0 %v2194_v34  ;;  %v829_v34 = vsub.s32 0, %v828_v37 }
 0x350   :  { %1091 = vmatprep.mubr.f32.mxu1 %v1437_v26  ;;  %1168 = vmatprep.mubr.f32.mxu0 %v1437_v26 }
 0x351   :  { %v830_v26 = vrot.slane %v825_v40, %v829_v34 }
 0x353   :  { %1092 = vmatmul.mubr.f32.gmra.mxu1 %v2222_v43  ;;  %1169 = vmatmul.mubr.f32.gmra.mxu0 %v2222_v43 }
 0x3ec   :  { %v933_v43 = vpop.f32.mrf.mxu1  ;;  %v1010_v48 = vpop.f32.mrf.mxu0 }
 0x3ed   :  { %v934_v49 = vadd.f32 %v933_v43, %v830_v26  ;;  %v1011_v50 = vadd.f32 %v1010_v48, %v838_v45 }
 0x3ee   :  { %v935_v51 = vpop.f32.mrf.mxu1  ;;  %v1012_v52 = vpop.f32.mrf.mxu0 }
 0x3ef   :  { %1175 = vst [vmem:[%s2456_s3] sm:$0xff] %v934_v49  ;;  %1177 = vst [vmem:[%s2456_s3 + $0x10] sm:$0xff] %v1011_v50  ;;  %v936_v53 = vadd.f32 %v935_v51, %v834_v46  ;;  %v1013_v54 = vadd.f32 %v1012_v52, %v842_v47 }
 0x3f1   :  { %1176 = vst [vmem:[%s2456_s3 + $0x8] sm:$0xff] %v936_v53  ;;  %1178 = vst [vmem:[%s2456_s3 + $0x18] sm:$0xff] %v1013_v54 }
 0x3f2   :  { %v939_v55 = vpop.f32.mrf.mxu1  ;;  %v1016_v56 = vpop.f32.mrf.mxu0 }
 0x3f3   :  { %v940_v57 = vadd.f32 %v939_v55, %v830_v26  ;;  %v1017_v58 = vadd.f32 %v1016_v56, %v838_v45 }
 0x3f4   :  { %v941_v59 = vpop.f32.mrf.mxu1  ;;  %v1018_v60 = vpop.f32.mrf.mxu0 }
 0x3f5   :  { %1183 = vst [vmem:[%s2456_s3 + $0x40] sm:$0x3] %v940_v57  ;;  %1185 = vst [vmem:[%s2456_s3 + $0x50] sm:$0x3] %v1017_v58  ;;  %v942_v61 = vadd.f32 %v941_v59, %v834_v46  ;;  %v1019_v62 = vadd.f32 %v1018_v60, %v842_v47 }
 0x3f7   :  { %1184 = vst [vmem:[%s2456_s3 + $0x48] sm:$0x3] %v942_v61  ;;  %1186 = vst [vmem:[%s2456_s3 + $0x58] sm:$0x3] %v1019_v62 }
 0x40f   :  { %v1087_v7 = vpop.f32.mrf.mxu1  ;;  %v1164_v8 = vpop.f32.mrf.mxu0 }
 0x410   :  { %v1088_v9 = vadd.f32 %v1087_v7, %v846_v3  ;;  %v1165_v10 = vadd.f32 %v1164_v8, %v854_v4 }
 0x411   :  { %v1089_v11 = vpop.f32.mrf.mxu1  ;;  %v1166_v12 = vpop.f32.mrf.mxu0 }
 0x412   :  { %1179 = vst [vmem:[%s2456_s3 + $0x20] sm:$0xff] %v1088_v9  ;;  %1181 = vst [vmem:[%s2456_s3 + $0x30] sm:$0xff] %v1165_v10  ;;  %v1090_v13 = vadd.f32 %v1089_v11, %v850_v5  ;;  %v1167_v14 = vadd.f32 %v1166_v12, %v858_v6 }
 0x413   :  { %v1093_v15 = vpop.f32.mrf.mxu1  ;;  %v1170_v16 = vpop.f32.mrf.mxu0 }
 0x414   :  { %1180 = vst [vmem:[%s2456_s3 + $0x28] sm:$0xff] %v1090_v13  ;;  %1182 = vst [vmem:[%s2456_s3 + $0x38] sm:$0xff] %v1167_v14  ;;  %v1094_v17 = vadd.f32 %v1093_v15, %v846_v3  ;;  %v1171_v18 = vadd.f32 %v1170_v16, %v854_v4 }
 0x415   :  { %v1095_v19 = vpop.f32.mrf.mxu1  ;;  %v1172_v20 = vpop.f32.mrf.mxu0 }
 0x416   :  { %1187 = vst [vmem:[%s2456_s3 + $0x60] sm:$0x3] %v1094_v17  ;;  %1189 = vst [vmem:[%s2456_s3 + $0x70] sm:$0x3] %v1171_v18  ;;  %v1096_v21 = vadd.f32 %v1095_v19, %v850_v5  ;;  %v1173_v22 = vadd.f32 %v1172_v20, %v858_v6 }
 0x418   :  { %1188 = vst [vmem:[%s2456_s3 + $0x68] sm:$0x3] %v1096_v21  ;;  %1190 = vst [vmem:[%s2456_s3 + $0x78] sm:$0x3] %v1173_v22 }

</bundles_post_ra>
